<compile_context>
chip_gen: v5e
topology: v5e:2x2
jax: 0.10.0
libtpu: 0.0.40
codegen_flags: <defaults>
</compile_context>

<pallas_src>
import functools

import numpy as np
import jax
import jax.numpy as jnp
from jax import lax
from jax.experimental import pallas as pl
from jax.experimental.pallas import tpu as pltpu


# ----------------------------------------------------------------------------
# Shape-only constant builders (numpy; constant-folded at trace time)
# ----------------------------------------------------------------------------

def upsample_matrix(in_size, out_size):
    """1-D linear interpolation matrix, align_corners=True. (out_size, in_size)."""
    A = np.zeros((out_size, in_size), dtype=np.float32)
    if out_size == 1 or in_size == 1:
        A[:, 0] = 1.0
    else:
        scale = (in_size - 1) / (out_size - 1)
        for o in range(out_size):
            src = o * scale
            i0 = min(int(np.floor(src)), in_size - 1)
            i1 = min(i0 + 1, in_size - 1)
            f = src - i0
            A[o, i0] += 1.0 - f
            A[o, i1] += f
    return A


def _down_row_select(N, H, Hd, K=4, stride=2, pad=1):
    """S[dh, (n,hd), (n,h)] = 1 where h = stride*hd - pad + dh (zero-pad OOB)."""
    S = np.zeros((K, N * Hd, N * H), dtype=np.float32)
    for dh in range(K):
        for n in range(N):
            for hd in range(Hd):
                h = stride * hd - pad + dh
                if 0 <= h < H:
                    S[dh, n * Hd + hd, n * H + h] = 1.0
    return S


def _up_row_select(N, H, K=3, pad=1):
    """R[dh, (n,h), (n,hp)] = 1 where hp = h - pad + dh (zero-pad OOB)."""
    R = np.zeros((K, N * H, N * H), dtype=np.float32)
    for dh in range(K):
        for n in range(N):
            for h in range(H):
                hp = h - pad + dh
                if 0 <= hp < H:
                    R[dh, n * H + h, n * H + hp] = 1.0
    return R


def _down_col_pattern(W, Wd, K=4, stride=2, pad=1):
    """B[dw, w, wd] = 1 where w = stride*wd - pad + dw."""
    B = np.zeros((K, W, Wd), dtype=np.float32)
    for dw in range(K):
        for wd in range(Wd):
            w = stride * wd - pad + dw
            if 0 <= w < W:
                B[dw, w, wd] = 1.0
    return B


def _up_col_pattern(W, K=3, pad=1):
    """B[dw, w, wp] = 1 where w = wp - pad + dw."""
    B = np.zeros((K, W, W), dtype=np.float32)
    for dw in range(K):
        for wp in range(W):
            w = wp - pad + dw
            if 0 <= w < W:
                B[dw, w, wp] = 1.0
    return B


# ----------------------------------------------------------------------------
# Fused Pallas kernel
# ----------------------------------------------------------------------------

def _unet_fused_kernel(x_ref, sdown_ref, tdown_ref, rprime_ref, tprime_ref,
                       g_ref, b_ref, y_ref, *, N, H, W, Hd, Cout, mxu_dtype):
    f32 = jnp.float32
    NH, NHd = N * H, N * Hd
    WCout = W * Cout
    inv_m = 1.0 / float(N * H * W)

    X = x_ref[...]                                           # (N*H, W*Cin)  f32
    A = jnp.where(X >= 0, X, 0.2 * X).astype(mxu_dtype)      # LeakyReLU(0.2)

    # ---- downconv 4x4, stride 2, pad 1 --------------------------------------
    # Gather the 4 h-taps (stride-2 row selection incl. zero padding), lay them
    # along lanes (each block is a full 128-lane group -> free concat), then
    # contract (dh, w, cin) -> (wd, cmid) in ONE fat-K matmul (K = 4*W*Cin).
    taps = [jnp.dot(sdown_ref[dh * NHd:(dh + 1) * NHd, :], A,
                    preferred_element_type=f32) for dh in range(4)]
    Gcat = jnp.concatenate(taps, axis=1).astype(mxu_dtype)   # (N*Hd, 4*W*Cin)
    D = jnp.dot(Gcat, tdown_ref[...], preferred_element_type=f32)  # (N*Hd, Wd*Cmid)

    # ---- uprelu; bilinear x2 upsample is folded into rprime / tprime --------
    Dr = jnp.maximum(D, 0.0).astype(mxu_dtype)

    # ---- upconv 3x3, pad 1 (upsample-fused) ----------------------------------
    # One matmul contracts (wd, cmid) into all three h-tap partials at once
    # (output lanes = (dh, w, cout) = 3 x 128-lane groups); then three aligned
    # row-operator matmuls (K = N*Hd) apply h-upsample + h-taps and accumulate.
    Pcat = jnp.dot(Dr, tprime_ref[...], preferred_element_type=f32)  # (N*Hd, 3*W*Cout)
    Pb = Pcat.astype(mxu_dtype)
    C = None
    for dh in range(3):
        contrib = jnp.dot(rprime_ref[dh * NH:(dh + 1) * NH, :],
                          Pb[:, dh * WCout:(dh + 1) * WCout],
                          preferred_element_type=f32)                # (N*H, W*Cout)
        C = contrib if C is None else C + contrib

    # ---- BatchNorm2d (training-mode batch stats, biased var, eps=1e-5) ------
    # Lanes are (w, cout). Per-channel reduction = sublane sum + cyclic lane
    # roll-tree over the W groups (XLU/VPU only, no MXU); the result is already
    # replicated at every w slot, so no broadcast-back is needed. Variance is
    # centred (two-pass) to avoid E[x^2]-E[x]^2 cancellation.
    def lane_group_allsum(v):                    # v: (1, W*Cout)
        s = v
        shift = Cout
        while shift < WCout:                     # requires W to be a power of 2
            s = s + pltpu.roll(s, shift=shift, axis=1)
            shift *= 2
        return s

    mean_f = lane_group_allsum(jnp.sum(C, axis=0, keepdims=True)) * inv_m
    Cc = C - mean_f
    var_f = lane_group_allsum(jnp.sum(Cc * Cc, axis=0, keepdims=True)) * inv_m
    scale = g_ref[...] * lax.rsqrt(var_f + 1e-5)             # (1, W*Cout)
    y_ref[...] = Cc * scale + b_ref[...]                     # 128 dense lanes


# ----------------------------------------------------------------------------
# Wrapper: one-time weight preprocessing + one pallas_call per forward
# ----------------------------------------------------------------------------

def prepare_unet_operands(params, x_shape, mxu_dtype=jnp.bfloat16):
    """Build structured MXU operands once (hoist out of the per-call path)."""
    N, H, W, Cin = x_shape
    assert H % 2 == 0 and W % 2 == 0
    # TODO(synk): non-power-of-two W needs a fold-matrix BN reduction instead
    # of the cyclic lane roll-tree used in the kernel epilogue.
    assert W & (W - 1) == 0

    w_down = params["w_down"]    # (Cmid, Cin, 4, 4)
    w_up = params["w_up"]        # (Cout, Cmid, 3, 3)
    gamma = params["bn_gamma"]   # (Cout,)
    beta = params["bn_beta"]     # (Cout,)
    Cmid, Cout = w_down.shape[0], w_up.shape[0]
    Hd, Wd = H // 2, W // 2

    # Structural matrices (numpy -> trace-time constants).
    Sdown = _down_row_select(N, H, Hd).reshape(4 * N * Hd, N * H)        # 0/1
    AhN = np.kron(np.eye(N, dtype=np.float32), upsample_matrix(Hd, H))   # (N*H, N*Hd)
    Rup = _up_row_select(N, H)                                           # (3, N*H, N*H)
    # Fold the h-upsample into the upconv row operators: R'_dh = Rup_dh @ AhN.
    Rprime = np.einsum('dij,jk->dik', Rup, AhN).reshape(3 * N * H, N * Hd)
    AwC = np.kron(upsample_matrix(Wd, W).T,
                  np.eye(Cmid, dtype=np.float32))                        # (Wd*Cmid, W*Cmid)

    # Weight-derived block-Toeplitz operands (tiny; pure weight preprocessing).
    B4 = jnp.asarray(_down_col_pattern(W, Wd))                           # (4, W, Wd)
    B3 = jnp.asarray(_up_col_pattern(W))                                 # (3, W, W)
    # Tdown[(dh,w,c), (wd,cm)] = w_down[cm, c, dh, w-(2*wd-1)]; stacked over dh.
    Tdown = jnp.einsum('uwv,mchu->hwcvm', B4, w_down).reshape(4 * W * Cin, Wd * Cmid)
    # Tup[dh, (w,cm), (wp,co)] = w_up[co, cm, dh, w - wp + 1]
    Tup = jnp.einsum('uwv,ocdu->dwcvo', B3, w_up).reshape(3, W * Cmid, W * Cout)
    # Fold the w-upsample into the upconv: T'_dh = AwC @ Tup_dh, taps along lanes.
    Tprime = jnp.einsum('km,dmo->dko', jnp.asarray(AwC), Tup)            # (3, Wd*Cmid, W*Cout)
    Tprime_wide = jnp.transpose(Tprime, (1, 0, 2)).reshape(Wd * Cmid, 3 * W * Cout)

    return {
        "sdown": jnp.asarray(Sdown, dtype=mxu_dtype),
        "tdown": Tdown.astype(mxu_dtype),
        "rprime": jnp.asarray(Rprime, dtype=mxu_dtype),
        "tprime": Tprime_wide.astype(mxu_dtype),
        "gamma_t": jnp.tile(gamma, W).reshape(1, W * Cout).astype(jnp.float32),
        "beta_t": jnp.tile(beta, W).reshape(1, W * Cout).astype(jnp.float32),
    }


def unet_block_apply(x_nhwc, ops, mxu_dtype=jnp.bfloat16):
    N, H, W, Cin = x_nhwc.shape
    Hd = H // 2
    NH, NHd = N * H, N * Hd
    WdCmid = ops["tdown"].shape[1]
    WCout = ops["gamma_t"].shape[1]
    Cout = WCout // W

    x2d = x_nhwc.reshape(NH, W * Cin)      # rows=(n,h), lanes=(w,c); free reshape

    kernel = functools.partial(
        _unet_fused_kernel, N=N, H=H, W=W, Hd=Hd, Cout=Cout, mxu_dtype=mxu_dtype)

    def _full(shape):
        return pl.BlockSpec(shape, lambda i: (0, 0))

    flops = int(2 * 4 * NHd * NH * (W * Cin)        # h-tap row selections
                + 2 * NHd * (4 * W * Cin) * WdCmid  # downconv fat-K contraction
                + 2 * NHd * WdCmid * (3 * WCout)    # upsample-fused upconv contraction
                + 2 * 3 * NH * NHd * WCout)         # upconv row operators
    bytes_accessed = int(
        4 * (x2d.size + NH * WCout + 2 * WCout)
        + 2 * (ops["sdown"].size + ops["tdown"].size
               + ops["rprime"].size + ops["tprime"].size))

    y2d = pl.pallas_call(
        kernel,
        out_shape=jax.ShapeDtypeStruct((NH, WCout), jnp.float32),
        grid=(1,),
        in_specs=[
            _full((NH, W * Cin)),          # x2d
            _full((4 * NHd, NH)),          # Sdown (0/1 stride-2 row select)
            _full((4 * W * Cin, WdCmid)),  # Tdown (stacked fat-K Toeplitz)
            _full((3 * NH, NHd)),          # R' = Rup @ AhN (h-upsample folded)
            _full((WdCmid, 3 * WCout)),    # T' = AwC @ Tup (w-upsample folded)
            _full((1, WCout)),             # gamma tiled over w
            _full((1, WCout)),             # beta  tiled over w
        ],
        out_specs=_full((NH, WCout)),
        compiler_params=pltpu.CompilerParams(
            dimension_semantics=("arbitrary",),
            vmem_limit_bytes=32 * 1024 * 1024),
        cost_estimate=pl.CostEstimate(
            flops=flops, transcendentals=WCout, bytes_accessed=bytes_accessed),
    )(x2d, ops["sdown"], ops["tdown"], ops["rprime"], ops["tprime"],
      ops["gamma_t"], ops["beta_t"])

    # Skip connection: torch.cat([x, y], dim=1) in NCHW == channel concat in
    # NHWC. Done wrapper-side so the kernel writes one dense 128-lane slab.
    y_nhwc = y2d.reshape(N, H, W, Cout)
    return jnp.concatenate([x_nhwc, y_nhwc], axis=-1)


def unet_block_forward(x_nhwc, params, mxu_dtype=jnp.bfloat16):
    """Convenience wrapper (builds operands per call; hoist for repeated use)."""
    ops = prepare_unet_operands(params, tuple(x_nhwc.shape), mxu_dtype)
    return unet_block_apply(x_nhwc, ops, mxu_dtype)


# ----------------------------------------------------------------------------
# Pure-JAX reference (same math as the original module) for a sanity check
# ----------------------------------------------------------------------------

def _im2col_ref(x, kh, kw, stride, pad):
    N, H, W, C = x.shape
    xp = jnp.pad(x, ((0, 0), (pad, pad), (pad, pad), (0, 0)))
    Ho = (H + 2 * pad - kh) // stride + 1
    Wo = (W + 2 * pad - kw) // stride + 1
    cols = []
    for dh in range(kh):
        for dw in range(kw):
            cols.append(xp[:, dh:dh + stride * Ho:stride,
                           dw:dw + stride * Wo:stride, :])
    patches = jnp.stack(cols, axis=3)
    return patches.reshape(N * Ho * Wo, kh * kw * C), Ho, Wo


def _flatten_w_ref(w_oihw):
    cout, cin, kh, kw = w_oihw.shape
    return jnp.transpose(w_oihw, (2, 3, 1, 0)).reshape(kh * kw * cin, cout)


def _reference_forward(x_nhwc, params):
    N, H, W, Cin = x_nhwc.shape
    w_down, w_up = params["w_down"], params["w_up"]
    gamma, beta = params["bn_gamma"], params["bn_beta"]
    Cmid, Cout = w_down.shape[0], w_up.shape[0]
    a = jnp.where(x_nhwc >= 0, x_nhwc, 0.2 * x_nhwc)
    P1, Hd, Wd = _im2col_ref(a, 4, 4, 2, 1)
    d = (P1 @ _flatten_w_ref(w_down)).reshape(N, Hd, Wd, Cmid)
    d = jnp.maximum(d, 0.0)
    Ah = jnp.asarray(upsample_matrix(Hd, H))
    Aw = jnp.asarray(upsample_matrix(Wd, W))
    u = jnp.einsum('hk,nkwc->nhwc', Ah, d)
    u = jnp.einsum('wk,nhkc->nhwc', Aw, u)
    P2, _, _ = _im2col_ref(u, 3, 3, 1, 1)
    c = (P2 @ _flatten_w_ref(w_up)).reshape(N, H, W, Cout)
    mean = jnp.mean(c, axis=(0, 1, 2), keepdims=True)
    var = jnp.mean((c - mean) ** 2, axis=(0, 1, 2), keepdims=True)
    y = (c - mean) * jax.lax.rsqrt(var + 1e-5) * gamma + beta
    return jnp.concatenate([x_nhwc, y], axis=-1)


# ----------------------------------------------------------------------------
# Driver
# ----------------------------------------------------------------------------

if __name__ == "__main__":
    # innermost UnetBlock: outer_nc=8, inner_input_nc=8 (=> inner_output_nc=8),
    # input_nc defaults to outer_nc=8.
    outer_nc = 8
    inner_input_nc = 8
    input_nc = outer_nc
    N, H, W = 2, 16, 16

    key = jax.random.PRNGKey(0)
    k_x, k_w1, k_w2, k_g, k_b = jax.random.split(key, 5)

    # PyTorch-style NCHW input, converted to NHWC (channels -> lanes).
    x_nchw = jax.random.normal(k_x, (N, input_nc, H, W), dtype=jnp.float32)
    x_nhwc = jnp.transpose(x_nchw, (0, 2, 3, 1))

    params = {
        "w_down": 0.1 * jax.random.normal(
            k_w1, (inner_input_nc, input_nc, 4, 4), dtype=jnp.float32),
        "w_up": 0.1 * jax.random.normal(
            k_w2, (outer_nc, inner_input_nc, 3, 3), dtype=jnp.float32),
        "bn_gamma": 1.0 + 0.1 * jax.random.normal(
            k_g, (outer_nc,), dtype=jnp.float32),
        "bn_beta": 0.1 * jax.random.normal(
            k_b, (outer_nc,), dtype=jnp.float32),
    }

    # One-time weight preprocessing (hoisted out of the per-call path).
    ops = prepare_unet_operands(params, tuple(x_nhwc.shape))
    apply_fn = jax.jit(unet_block_apply)
    out = jax.block_until_ready(apply_fn(x_nhwc, ops))

    expected_shape = (N, H, W, input_nc + outer_nc)  # NHWC of torch.cat on dim=1
    assert out.shape == expected_shape, (out.shape, expected_shape)
    assert bool(jnp.all(jnp.isfinite(out)))

    # bf16 MXU operands with f32 accumulation -> expected max |err| ~ a few e-2
    # after BN normalization; 1e-1 keeps ~2x headroom while being 2x tighter
    # than the previous check.
    ref = _reference_forward(x_nhwc, params)
    max_err = float(jnp.max(jnp.abs(out - ref)))
    assert max_err < 1e-1, max_err

    print("KERNEL_OK")
</pallas_src>

<mosaic_0001>
module attributes {stable_mosaic.version = 11 : i64} {
  func.func @_unet_fused_kernel(%arg0: i32, %arg1: memref<32x128xf32, #tpu.memory_space<vmem>>, %arg2: memref<64x32xbf16, #tpu.memory_space<vmem>>, %arg3: memref<512x64xbf16, #tpu.memory_space<vmem>>, %arg4: memref<96x16xbf16, #tpu.memory_space<vmem>>, %arg5: memref<64x384xbf16, #tpu.memory_space<vmem>>, %arg6: memref<1x128xf32, #tpu.memory_space<vmem>>, %arg7: memref<1x128xf32, #tpu.memory_space<vmem>>, %arg8: memref<32x128xf32, #tpu.memory_space<vmem>>) attributes {dimension_semantics = [#tpu.dimension_semantics<arbitrary>], iteration_bounds = array<i64: 1>, scalar_prefetch = 0 : i64, scratch_operands = 0 : i64, tpu.core_type = #tpu.core_type<tc>, window_params = [{pipeline_mode = #tpu.pipeline_mode<synchronous>, transform_indices = @transform_0, window_bounds = array<i64: 32, 128>}, {pipeline_mode = #tpu.pipeline_mode<synchronous>, transform_indices = @transform_1, window_bounds = array<i64: 64, 32>}, {pipeline_mode = #tpu.pipeline_mode<synchronous>, transform_indices = @transform_2, window_bounds = array<i64: 512, 64>}, {pipeline_mode = #tpu.pipeline_mode<synchronous>, transform_indices = @transform_3, window_bounds = array<i64: 96, 16>}, {pipeline_mode = #tpu.pipeline_mode<synchronous>, transform_indices = @transform_4, window_bounds = array<i64: 64, 384>}, {pipeline_mode = #tpu.pipeline_mode<synchronous>, transform_indices = @transform_5, window_bounds = array<i64: 1, 128>}, {pipeline_mode = #tpu.pipeline_mode<synchronous>, transform_indices = @transform_6, window_bounds = array<i64: 1, 128>}, {pipeline_mode = #tpu.pipeline_mode<synchronous>, transform_indices = @transform_7, window_bounds = array<i64: 32, 128>}]} {
    %c0 = arith.constant 0 : index
    %c0_0 = arith.constant 0 : index
    %0 = vector.load %arg1[%c0, %c0_0] : memref<32x128xf32, #tpu.memory_space<vmem>>, vector<32x128xf32>
    %cst = arith.constant 0.000000e+00 : f32
    %1 = vector.broadcast %cst : f32 to vector<32x128xf32>
    %2 = arith.cmpf oge, %0, %1 : vector<32x128xf32>
    %cst_1 = arith.constant 2.000000e-01 : f32
    %3 = vector.broadcast %cst_1 : f32 to vector<32x128xf32>
    %4 = arith.mulf %3, %0 : vector<32x128xf32>
    %5 = arith.select %2, %0, %4 : vector<32x128xi1>, vector<32x128xf32>
    %6 = arith.truncf %5 : vector<32x128xf32> to vector<32x128xbf16>
    %c0_2 = arith.constant 0 : index
    %c0_3 = arith.constant 0 : index
    %7 = vector.load %arg2[%c0_2, %c0_3] : memref<64x32xbf16, #tpu.memory_space<vmem>>, vector<16x32xbf16>
    %cst_4 = arith.constant dense<0.000000e+00> : vector<16x128xf32>
    %8 = tpu.matmul %7, %6, %cst_4 {dimension_numbers = #tpu.dot_dimension_numbers<[1], [0], [0], [1], [0, 0, 1, 1], [], []>} : vector<16x32xbf16>, vector<32x128xbf16>, vector<16x128xf32> -> vector<16x128xf32>
    %c16 = arith.constant 16 : index
    %c0_5 = arith.constant 0 : index
    %9 = vector.load %arg2[%c16, %c0_5] : memref<64x32xbf16, #tpu.memory_space<vmem>>, vector<16x32xbf16>
    %cst_6 = arith.constant dense<0.000000e+00> : vector<16x128xf32>
    %10 = tpu.matmul %9, %6, %cst_6 {dimension_numbers = #tpu.dot_dimension_numbers<[1], [0], [0], [1], [0, 0, 1, 1], [], []>} : vector<16x32xbf16>, vector<32x128xbf16>, vector<16x128xf32> -> vector<16x128xf32>
    %c32 = arith.constant 32 : index
    %c0_7 = arith.constant 0 : index
    %11 = vector.load %arg2[%c32, %c0_7] : memref<64x32xbf16, #tpu.memory_space<vmem>>, vector<16x32xbf16>
    %cst_8 = arith.constant dense<0.000000e+00> : vector<16x128xf32>
    %12 = tpu.matmul %11, %6, %cst_8 {dimension_numbers = #tpu.dot_dimension_numbers<[1], [0], [0], [1], [0, 0, 1, 1], [], []>} : vector<16x32xbf16>, vector<32x128xbf16>, vector<16x128xf32> -> vector<16x128xf32>
    %c48 = arith.constant 48 : index
    %c0_9 = arith.constant 0 : index
    %13 = vector.load %arg2[%c48, %c0_9] : memref<64x32xbf16, #tpu.memory_space<vmem>>, vector<16x32xbf16>
    %cst_10 = arith.constant dense<0.000000e+00> : vector<16x128xf32>
    %14 = tpu.matmul %13, %6, %cst_10 {dimension_numbers = #tpu.dot_dimension_numbers<[1], [0], [0], [1], [0, 0, 1, 1], [], []>} : vector<16x32xbf16>, vector<32x128xbf16>, vector<16x128xf32> -> vector<16x128xf32>
    %15 = tpu.concatenate %8, %10, %12, %14 in 1 : vector<16x128xf32>, vector<16x128xf32>, vector<16x128xf32>, vector<16x128xf32> -> vector<16x512xf32>
    %16 = arith.truncf %15 : vector<16x512xf32> to vector<16x512xbf16>
    %c0_11 = arith.constant 0 : index
    %c0_12 = arith.constant 0 : index
    %17 = vector.load %arg3[%c0_11, %c0_12] : memref<512x64xbf16, #tpu.memory_space<vmem>>, vector<512x64xbf16>
    %cst_13 = arith.constant dense<0.000000e+00> : vector<16x64xf32>
    %18 = tpu.matmul %16, %17, %cst_13 {dimension_numbers = #tpu.dot_dimension_numbers<[1], [0], [0], [1], [0, 0, 1, 1], [], []>} : vector<16x512xbf16>, vector<512x64xbf16>, vector<16x64xf32> -> vector<16x64xf32>
    %cst_14 = arith.constant 0.000000e+00 : f32
    %19 = vector.broadcast %cst_14 : f32 to vector<16x64xf32>
    %20 = arith.maximumf %18, %19 : vector<16x64xf32>
    %21 = arith.truncf %20 : vector<16x64xf32> to vector<16x64xbf16>
    %c0_15 = arith.constant 0 : index
    %c0_16 = arith.constant 0 : index
    %22 = vector.load %arg5[%c0_15, %c0_16] : memref<64x384xbf16, #tpu.memory_space<vmem>>, vector<64x384xbf16>
    %cst_17 = arith.constant dense<0.000000e+00> : vector<16x384xf32>
    %23 = tpu.matmul %21, %22, %cst_17 {dimension_numbers = #tpu.dot_dimension_numbers<[1], [0], [0], [1], [0, 0, 1, 1], [], []>} : vector<16x64xbf16>, vector<64x384xbf16>, vector<16x384xf32> -> vector<16x384xf32>
    %24 = arith.truncf %23 : vector<16x384xf32> to vector<16x384xbf16>
    %c0_18 = arith.constant 0 : index
    %c0_19 = arith.constant 0 : index
    %25 = vector.load %arg4[%c0_18, %c0_19] : memref<96x16xbf16, #tpu.memory_space<vmem>>, vector<32x16xbf16>
    %26 = vector.extract_strided_slice %24 {offsets = [0, 0], sizes = [16, 128], strides = [1, 1]} : vector<16x384xbf16> to vector<16x128xbf16>
    %cst_20 = arith.constant dense<0.000000e+00> : vector<32x128xf32>
    %27 = tpu.matmul %25, %26, %cst_20 {dimension_numbers = #tpu.dot_dimension_numbers<[1], [0], [0], [1], [0, 0, 1, 1], [], []>} : vector<32x16xbf16>, vector<16x128xbf16>, vector<32x128xf32> -> vector<32x128xf32>
    %c32_21 = arith.constant 32 : index
    %c0_22 = arith.constant 0 : index
    %28 = vector.load %arg4[%c32_21, %c0_22] : memref<96x16xbf16, #tpu.memory_space<vmem>>, vector<32x16xbf16>
    %29 = vector.extract_strided_slice %24 {offsets = [0, 128], sizes = [16, 128], strides = [1, 1]} : vector<16x384xbf16> to vector<16x128xbf16>
    %cst_23 = arith.constant dense<0.000000e+00> : vector<32x128xf32>
    %30 = tpu.matmul %28, %29, %cst_23 {dimension_numbers = #tpu.dot_dimension_numbers<[1], [0], [0], [1], [0, 0, 1, 1], [], []>} : vector<32x16xbf16>, vector<16x128xbf16>, vector<32x128xf32> -> vector<32x128xf32>
    %31 = arith.addf %27, %30 : vector<32x128xf32>
    %c64 = arith.constant 64 : index
    %c0_24 = arith.constant 0 : index
    %32 = vector.load %arg4[%c64, %c0_24] : memref<96x16xbf16, #tpu.memory_space<vmem>>, vector<32x16xbf16>
    %33 = vector.extract_strided_slice %24 {offsets = [0, 256], sizes = [16, 128], strides = [1, 1]} : vector<16x384xbf16> to vector<16x128xbf16>
    %cst_25 = arith.constant dense<0.000000e+00> : vector<32x128xf32>
    %34 = tpu.matmul %32, %33, %cst_25 {dimension_numbers = #tpu.dot_dimension_numbers<[1], [0], [0], [1], [0, 0, 1, 1], [], []>} : vector<32x16xbf16>, vector<16x128xbf16>, vector<32x128xf32> -> vector<32x128xf32>
    %35 = arith.addf %31, %34 : vector<32x128xf32>
    %cst_26 = arith.constant dense<0.000000e+00> : vector<128xf32>
    %36 = vector.multi_reduction <add>, %35, %cst_26 [0] : vector<32x128xf32> to vector<128xf32>
    %37 = vector.shape_cast %36 : vector<128xf32> to vector<1x128xf32>
    %c8_i32 = arith.constant 8 : i32
    %38 = tpu.dynamic_rotate %37 by %c8_i32 dim 1 : vector<1x128xf32>, i32 -> vector<1x128xf32>
    %39 = arith.addf %37, %38 : vector<1x128xf32>
    %c16_i32 = arith.constant 16 : i32
    %40 = tpu.dynamic_rotate %39 by %c16_i32 dim 1 : vector<1x128xf32>, i32 -> vector<1x128xf32>
    %41 = arith.addf %39, %40 : vector<1x128xf32>
    %c32_i32 = arith.constant 32 : i32
    %42 = tpu.dynamic_rotate %41 by %c32_i32 dim 1 : vector<1x128xf32>, i32 -> vector<1x128xf32>
    %43 = arith.addf %41, %42 : vector<1x128xf32>
    %c64_i32 = arith.constant 64 : i32
    %44 = tpu.dynamic_rotate %43 by %c64_i32 dim 1 : vector<1x128xf32>, i32 -> vector<1x128xf32>
    %45 = arith.addf %43, %44 : vector<1x128xf32>
    %cst_27 = arith.constant 0.001953125 : f32
    %46 = vector.broadcast %cst_27 : f32 to vector<1x128xf32>
    %47 = arith.mulf %45, %46 : vector<1x128xf32>
    %48 = vector.broadcast %47 : vector<1x128xf32> to vector<32x128xf32>
    %49 = arith.subf %35, %48 : vector<32x128xf32>
    %50 = arith.mulf %49, %49 : vector<32x128xf32>
    %cst_28 = arith.constant dense<0.000000e+00> : vector<128xf32>
    %51 = vector.multi_reduction <add>, %50, %cst_28 [0] : vector<32x128xf32> to vector<128xf32>
    %52 = vector.shape_cast %51 : vector<128xf32> to vector<1x128xf32>
    %c8_i32_29 = arith.constant 8 : i32
    %53 = tpu.dynamic_rotate %52 by %c8_i32_29 dim 1 : vector<1x128xf32>, i32 -> vector<1x128xf32>
    %54 = arith.addf %52, %53 : vector<1x128xf32>
    %c16_i32_30 = arith.constant 16 : i32
    %55 = tpu.dynamic_rotate %54 by %c16_i32_30 dim 1 : vector<1x128xf32>, i32 -> vector<1x128xf32>
    %56 = arith.addf %54, %55 : vector<1x128xf32>
    %c32_i32_31 = arith.constant 32 : i32
    %57 = tpu.dynamic_rotate %56 by %c32_i32_31 dim 1 : vector<1x128xf32>, i32 -> vector<1x128xf32>
    %58 = arith.addf %56, %57 : vector<1x128xf32>
    %c64_i32_32 = arith.constant 64 : i32
    %59 = tpu.dynamic_rotate %58 by %c64_i32_32 dim 1 : vector<1x128xf32>, i32 -> vector<1x128xf32>
    %60 = arith.addf %58, %59 : vector<1x128xf32>
    %cst_33 = arith.constant 0.001953125 : f32
    %61 = vector.broadcast %cst_33 : f32 to vector<1x128xf32>
    %62 = arith.mulf %60, %61 : vector<1x128xf32>
    %c0_34 = arith.constant 0 : index
    %c0_35 = arith.constant 0 : index
    %63 = vector.load %arg6[%c0_34, %c0_35] : memref<1x128xf32, #tpu.memory_space<vmem>>, vector<1x128xf32>
    %cst_36 = arith.constant 9.99999974E-6 : f32
    %64 = vector.broadcast %cst_36 : f32 to vector<1x128xf32>
    %65 = arith.addf %62, %64 : vector<1x128xf32>
    %66 = math.rsqrt %65 : vector<1x128xf32>
    %67 = arith.mulf %63, %66 : vector<1x128xf32>
    %68 = vector.broadcast %67 : vector<1x128xf32> to vector<32x128xf32>
    %69 = arith.mulf %49, %68 : vector<32x128xf32>
    %c0_37 = arith.constant 0 : index
    %c0_38 = arith.constant 0 : index
    %70 = vector.load %arg7[%c0_37, %c0_38] : memref<1x128xf32, #tpu.memory_space<vmem>>, vector<1x128xf32>
    %71 = vector.broadcast %70 : vector<1x128xf32> to vector<32x128xf32>
    %72 = arith.addf %69, %71 : vector<32x128xf32>
    %c0_39 = arith.constant 0 : index
    %c0_40 = arith.constant 0 : index
    %73 = vector.load %arg8[%c0_39, %c0_40] : memref<32x128xf32, #tpu.memory_space<vmem>>, vector<32x128xf32>
    tpu.vector_store %arg8[%c0_39, %c0_40], %72 {strides = array<i32>} : memref<32x128xf32, #tpu.memory_space<vmem>>, vector<32x128xf32>,
    return
  }
  func.func @transform_0(%arg0: i32) -> (i32, i32) {
    %c0_i32 = arith.constant 0 : i32
    %c0_i32_0 = arith.constant 0 : i32
    %c0_i32_1 = arith.constant 0 : i32
    return %c0_i32, %c0_i32_0 : i32, i32
  }
  func.func @transform_1(%arg0: i32) -> (i32, i32) {
    %c0_i32 = arith.constant 0 : i32
    %c0_i32_0 = arith.constant 0 : i32
    %c0_i32_1 = arith.constant 0 : i32
    return %c0_i32, %c0_i32_0 : i32, i32
  }
  func.func @transform_2(%arg0: i32) -> (i32, i32) {
    %c0_i32 = arith.constant 0 : i32
    %c0_i32_0 = arith.constant 0 : i32
    %c0_i32_1 = arith.constant 0 : i32
    return %c0_i32, %c0_i32_0 : i32, i32
  }
  func.func @transform_3(%arg0: i32) -> (i32, i32) {
    %c0_i32 = arith.constant 0 : i32
    %c0_i32_0 = arith.constant 0 : i32
    %c0_i32_1 = arith.constant 0 : i32
    return %c0_i32, %c0_i32_0 : i32, i32
  }
  func.func @transform_4(%arg0: i32) -> (i32, i32) {
    %c0_i32 = arith.constant 0 : i32
    %c0_i32_0 = arith.constant 0 : i32
    %c0_i32_1 = arith.constant 0 : i32
    return %c0_i32, %c0_i32_0 : i32, i32
  }
  func.func @transform_5(%arg0: i32) -> (i32, i32) {
    %c0_i32 = arith.constant 0 : i32
    %c0_i32_0 = arith.constant 0 : i32
    %c0_i32_1 = arith.constant 0 : i32
    return %c0_i32, %c0_i32_0 : i32, i32
  }
  func.func @transform_6(%arg0: i32) -> (i32, i32) {
    %c0_i32 = arith.constant 0 : i32
    %c0_i32_0 = arith.constant 0 : i32
    %c0_i32_1 = arith.constant 0 : i32
    return %c0_i32, %c0_i32_0 : i32, i32
  }
  func.func @transform_7(%arg0: i32) -> (i32, i32) {
    %c0_i32 = arith.constant 0 : i32
    %c0_i32_0 = arith.constant 0 : i32
    %c0_i32_1 = arith.constant 0 : i32
    return %c0_i32, %c0_i32_0 : i32, i32
  }
}

</mosaic_0001>

<bundles_post_ra>
// kernel: unet_block_apply.1
= control target key start
LH: loop header
LB: loop body
LE: loop exit
PB: predicated region body
PF: predicated region fallthrough
CT: control target
= control target key end

     0   :  { %vm52_vm4 = vcmask 261120   ;;  %vm541_vm5 = vcmask 523264   ;;  %vm615_vm6 = vcmask 130048   ;;  %s1110_s12 = smov 32   ;;  %s1111_s13 = smov 64   ;;  %s1394_s0 = inlined_call_operand.vmem [shape: f32[32,128], index: 0, kind: input, shape index: {}]   ;;  %s1395_s2 = inlined_call_operand.vmem [shape: bf16[512,64], index: 2, kind: input, shape index: {}]   ;;  %s1396_s1 = inlined_call_operand.vmem [shape: bf16[64,32], index: 1, kind: input, shape index: {}]   ;;  %s1397_s4 = inlined_call_operand.vmem [shape: bf16[64,384], index: 4, kind: input, shape index: {}]   ;;  %s1398_s3 = inlined_call_operand.vmem [shape: bf16[96,16], index: 3, kind: input, shape index: {}]   ;;  %s1399_s6 = inlined_call_operand.vmem [shape: f32[1,128], index: 6, kind: input, shape index: {}]   ;;  %s1400_s5 = inlined_call_operand.vmem [shape: f32[1,128], index: 5, kind: input, shape index: {}]   ;;  %s1401_s7 = inlined_call_operand.vmem [shape: f32[32,128], index: 7, kind: output, shape index: {}]  }
   0x1   :  { %v29_v0 = vld [vmem:[%s1394_s0 + $0x10] sm:$0xff]  ;;  %v30_v1 = vld [vmem:[%s1394_s0 + $0x18] sm:$0xff]  ;;  %v27_v2 = vld [vmem:[%s1394_s0] sm:$0xff] }
   0x2   :  { %vm33_vm0 = vcmp.ge.f32.partialorder %v29_v0, 0.0  ;;  %vm34_vm1 = vcmp.ge.f32.partialorder %v30_v1, 0.0  ;;  %v37_v3 = vmul.f32 0.2, %v29_v0  ;;  %v38_v4 = vmul.f32 0.2, %v30_v1 }
   0x3   :  { %v28_v5 = vld [vmem:[%s1394_s0 + $0x8] sm:$0xff]  ;;  %vm31_vm2 = vcmp.ge.f32.partialorder %v27_v2, 0.0  ;;  %v35_v6 = vmul.f32 0.2, %v27_v2  ;;  %v1058_v14 = vld [vmem:[%s1395_s2 + $0x38] sm:$0xff]  ;;  %v1047_v16 = vld [vmem:[%s1396_s1] sm:$0xff] }
   0x4   :  { %v41_v7 = vsel %vm33_vm0, %v29_v0, %v37_v3  ;;  %v42_v8 = vsel %vm34_vm1, %v30_v1, %v38_v4  ;;  %vm32_vm3 = vcmp.ge.f32.partialorder %v28_v5, 0.0  ;;  %v36_v9 = vmul.f32 0.2, %v28_v5  ;;  %v1066_v15 = vld [vmem:[%s1395_s2 + $0x78] sm:$0xff]  ;;  %v1048_v17 = vld [vmem:[%s1396_s1 + $0x8] sm:$0xff]  ;;  %v1049_v18 = vld [vmem:[%s1396_s1 + $0x10] sm:$0xff] }
   0x5   :  { %v44_v10 = vpack.c.bf16 %v42_v8, %v41_v7  ;;  %v39_v11 = vsel %vm31_vm2, %v27_v2, %v35_v6  ;;  %v1050_v19 = vld [vmem:[%s1396_s1 + $0x18] sm:$0xff]  ;;  %v1057_v22 = vld [vmem:[%s1395_s2 + $0x30] sm:$0xff]  ;;  %v1056_v26 = vld [vmem:[%s1395_s2 + $0x28] sm:$0xff]  ;;  %s1109_s0 = smov 16  }
   0x6   :  { %v40_v12 = vsel %vm32_vm3, %v28_v5, %v36_v9  ;;  %v1074_v20 = vld [vmem:[%s1395_s2 + $0xb8] sm:$0xff]  ;;  %v1065_v23 = vld [vmem:[%s1395_s2 + $0x70] sm:$0xff]  ;;  %v1064_v27 = vld [vmem:[%s1395_s2 + $0x68] sm:$0xff] }
   0x7   :  { %62 = vmatpush.bf16.msra.mxu0 %v44_v10  ;;  %86 = vmatpush.bf16.msra.mxu1 %v44_v10  ;;  %v43_v13 = vpack.c.bf16 %v40_v12, %v39_v11  ;;  %v1082_v21 = vld [vmem:[%s1395_s2 + $0xf8] sm:$0xff]  ;;  %v1073_v24 = vld [vmem:[%s1395_s2 + $0xb0] sm:$0xff]  ;;  %v1072_v28 = vld [vmem:[%s1395_s2 + $0xa8] sm:$0xff] }
   0x8   :  { %110 = vmatpush.bf16.msra.mxu2 %v44_v10  ;;  %134 = vmatpush.bf16.msra.mxu3 %v44_v10  ;;  %v1081_v25 = vld [vmem:[%s1395_s2 + $0xf0] sm:$0xff]  ;;  %v1080_v29 = vld [vmem:[%s1395_s2 + $0xe8] sm:$0xff]  ;;  %v1055_v30 = vld [vmem:[%s1395_s2 + $0x20] sm:$0xff] }
   0x9   :  { %v1063_v31 = vld [vmem:[%s1395_s2 + $0x60] sm:$0xff]  ;;  %v1054_v34 = vld [vmem:[%s1395_s2 + $0x18] sm:$0xff]  ;;  %v1053_v36 = vld [vmem:[%s1395_s2 + $0x10] sm:$0xff] }
   0xa   :  { %v1071_v32 = vld [vmem:[%s1395_s2 + $0xa0] sm:$0xff]  ;;  %v1062_v35 = vld [vmem:[%s1395_s2 + $0x58] sm:$0xff]  ;;  %v1061_v37 = vld [vmem:[%s1395_s2 + $0x50] sm:$0xff] }
   0xb   :  { %63 = vmatpush.bf16.msra.mxu0 %v43_v13  ;;  %87 = vmatpush.bf16.msra.mxu1 %v43_v13  ;;  %v1079_v33 = vld [vmem:[%s1395_s2 + $0xe0] sm:$0xff]  ;;  %v1070_v38 = vld [vmem:[%s1395_s2 + $0x98] sm:$0xff]  ;;  %v1052_v40 = vld [vmem:[%s1395_s2 + $0x8] sm:$0xff] }
   0xc   :  { %111 = vmatpush.bf16.msra.mxu2 %v43_v13  ;;  %135 = vmatpush.bf16.msra.mxu3 %v43_v13  ;;  %v1078_v39 = vld [vmem:[%s1395_s2 + $0xd8] sm:$0xff]  ;;  %v1060_v41 = vld [vmem:[%s1395_s2 + $0x48] sm:$0xff]  ;;  %v1069_v42 = vld [vmem:[%s1395_s2 + $0x90] sm:$0xff] }
   0xd   :  { %v1077_v43 = vld [vmem:[%s1395_s2 + $0xd0] sm:$0xff]  ;;  %v1051_v44 = vld [vmem:[%s1395_s2] sm:$0xff]  ;;  %v1068_v46 = vld [vmem:[%s1395_s2 + $0x88] sm:$0xff] }
   0xe   :  { %822 = vmatmul.msk.bf16.vlgmr.msra.gmra.mxu0 %vm52_vm4, %v1047_v16  ;;  %827 = vmatmul.msk.bf16.vlgmr.msra.gmra.mxu1 %vm52_vm4, %v1048_v17  ;;  %v1059_v45 = vld [vmem:[%s1395_s2 + $0x40] sm:$0xff]  ;;  %v1076_v47 = vld [vmem:[%s1395_s2 + $0xc8] sm:$0xff]  ;;  %v1093_v63 = vld [vmem:[%s1397_s4 + $0x50] sm:$0xf0] }
   0xf   :  { %402 = vmatpush.bf16.msrb.mxu0 %v1058_v14  ;;  %416 = vmatpush.bf16.msrb.mxu1 %v1066_v15  ;;  %v1067_v48 = vld [vmem:[%s1395_s2 + $0x80] sm:$0xff]  ;;  %v1004_v62 = vld [vmem:[%s1397_s4 + $0x48] sm:$0xf]  ;;  %v1092_v0 = vld [vmem:[%s1397_s4 + $0x4c] sm:$0xf] }
  0x10   :  { %832 = vmatmul.msk.bf16.vlgmr.msra.gmra.mxu2 %vm52_vm4, %v1049_v18  ;;  %837 = vmatmul.msk.bf16.vlgmr.msra.gmra.mxu3 %vm52_vm4, %v1050_v19  ;;  %v1075_v49 = vld [vmem:[%s1395_s2 + $0xc0] sm:$0xff]  ;;  %v1005_v1 = vor.u32 %v1093_v63, %v1004_v62  ;;  %v1006_v2 = vld [vmem:[%s1397_s4 + $0x54] sm:$0xf0]  ;;  %v992_v4 = vld [vmem:[%s1397_s4 + $0x30] sm:$0xf] }
  0x11   :  { %430 = vmatpush.bf16.msrb.mxu2 %v1074_v20  ;;  %444 = vmatpush.bf16.msrb.mxu3 %v1082_v21  ;;  %v1009_v3 = vor.u32 %v1092_v0, %v1006_v2  ;;  %v1090_v5 = vld [vmem:[%s1397_s4 + $0x38] sm:$0xf0]  ;;  %v1089_v6 = vld [vmem:[%s1397_s4 + $0x34] sm:$0xf]  ;;  %v994_v8 = vld [vmem:[%s1397_s4 + $0x3c] sm:$0xf0] }
  0x12   :  { %v993_v7 = vor.u32 %v1090_v5, %v992_v4  ;;  %v997_v9 = vor.u32 %v1089_v6, %v994_v8  ;;  %v980_v10 = vld [vmem:[%s1397_s4 + $0x18] sm:$0xf]  ;;  %v1087_v11 = vld [vmem:[%s1397_s4 + $0x20] sm:$0xf0]  ;;  %v1086_v12 = vld [vmem:[%s1397_s4 + $0x1c] sm:$0xf] }
  0x13   :  { %403 = vmatpush.bf16.msrb.mxu0 %v1057_v22  ;;  %417 = vmatpush.bf16.msrb.mxu1 %v1065_v23  ;;  %v981_v13 = vor.u32 %v1087_v11, %v980_v10  ;;  %v982_v14 = vld [vmem:[%s1397_s4 + $0x24] sm:$0xf0]  ;;  %v968_v16 = vld [vmem:[%s1397_s4] sm:$0xf]  ;;  %v1084_v17 = vld [vmem:[%s1397_s4 + $0x8] sm:$0xf0] }
  0x14   :  { %v985_v15 = vor.u32 %v1086_v12, %v982_v14  ;;  %v1083_v18 = vld [vmem:[%s1397_s4 + $0x4] sm:$0xf]  ;;  %v969_v19 = vor.u32 %v1084_v17, %v968_v16  ;;  %v970_v20 = vld [vmem:[%s1397_s4 + $0xc] sm:$0xf0]  ;;  %v1094_v23 = vld [vmem:[%s1397_s4 + $0x58] sm:$0xf0] }
  0x15   :  { %431 = vmatpush.bf16.msrb.mxu2 %v1073_v24  ;;  %445 = vmatpush.bf16.msrb.mxu3 %v1081_v25  ;;  %v973_v21 = vor.u32 %v1083_v18, %v970_v20  ;;  %v1012_v22 = vld [vmem:[%s1397_s4 + $0x50] sm:$0xf]  ;;  %v1000_v25 = vld [vmem:[%s1397_s4 + $0x38] sm:$0xf]  ;;  %v1095_v0 = vld [vmem:[%s1398_s3] sm:$0xff] }
  0x16   :  { %v1013_v24 = vor.u32 %v1094_v23, %v1012_v22  ;;  %v1097_v63 = vld [vmem:[%s1398_s3 + $0x10] sm:$0xff]  ;;  %v1099_v8 = vld [vmem:[%s1398_s3 + $0x20] sm:$0xff]  ;;  %v1096_v10 = vld [vmem:[%s1398_s3 + $0x8] sm:$0xff] }
  0x17   :  { %404 = vmatpush.bf16.msrb.mxu0 %v1056_v26  ;;  %418 = vmatpush.bf16.msrb.mxu1 %v1064_v27  ;;  %v1091_v26 = vld [vmem:[%s1397_s4 + $0x40] sm:$0xf0]  ;;  %v1100_v11 = vld [vmem:[%s1398_s3 + $0x28] sm:$0xff] }
  0x18   :  { %v1001_v27 = vor.u32 %v1091_v26, %v1000_v25 }
  0x19   :  { %432 = vmatpush.bf16.msrb.mxu2 %v1072_v28  ;;  %446 = vmatpush.bf16.msrb.mxu3 %v1080_v29  ;;  %v988_v28 = vld [vmem:[%s1397_s4 + $0x20] sm:$0xf]  ;;  %v1088_v29 = vld [vmem:[%s1397_s4 + $0x28] sm:$0xf0] }
  0x1b   :  { %405 = vmatpush.bf16.msrb.mxu0 %v1055_v30  ;;  %419 = vmatpush.bf16.msrb.mxu1 %v1063_v31  ;;  %v989_v30 = vor.u32 %v1088_v29, %v988_v28  ;;  %v976_v31 = vld [vmem:[%s1397_s4 + $0x8] sm:$0xf] }
  0x1d   :  { %433 = vmatpush.bf16.msrb.mxu2 %v1071_v32  ;;  %447 = vmatpush.bf16.msrb.mxu3 %v1079_v33  ;;  %v1085_v32 = vld [vmem:[%s1397_s4 + $0x10] sm:$0xf0] }
  0x1f   :  { %406 = vmatpush.bf16.msrb.mxu0 %v1054_v34  ;;  %420 = vmatpush.bf16.msrb.mxu1 %v1062_v35  ;;  %v977_v35 = vor.u32 %v1085_v32, %v976_v31 }
  0x21   :  { %434 = vmatpush.bf16.msrb.mxu2 %v1070_v38  ;;  %448 = vmatpush.bf16.msrb.mxu3 %v1078_v39 }
  0x23   :  { %407 = vmatpush.bf16.msrb.mxu0 %v1053_v36  ;;  %421 = vmatpush.bf16.msrb.mxu1 %v1061_v37 }
  0x25   :  { %435 = vmatpush.bf16.msrb.mxu2 %v1069_v42  ;;  %449 = vmatpush.bf16.msrb.mxu3 %v1077_v43 }
  0x27   :  { %408 = vmatpush.bf16.msrb.mxu0 %v1052_v40  ;;  %422 = vmatpush.bf16.msrb.mxu1 %v1060_v41 }
  0x29   :  { %436 = vmatpush.bf16.msrb.mxu2 %v1068_v46  ;;  %450 = vmatpush.bf16.msrb.mxu3 %v1076_v47 }
  0x2b   :  { %409 = vmatpush.bf16.msrb.mxu0 %v1051_v44  ;;  %423 = vmatpush.bf16.msrb.mxu1 %v1059_v45 }
  0x2d   :  { %437 = vmatpush.bf16.msrb.mxu2 %v1067_v48  ;;  %451 = vmatpush.bf16.msrb.mxu3 %v1075_v49 }
  0x2f   :  { %563 = vmatpush.bf16.msra.mxu1 %v1009_v3 }
  0x31   :  { %549 = vmatpush.bf16.msra.mxu2 %v1005_v1 }
  0x33   :  { %564 = vmatpush.bf16.msra.mxu1 %v997_v9  ;;  %v1098_v9 = vld [vmem:[%s1398_s3 + $0x18] sm:$0xff]  ;;  %s1108_s3 = smov 8  }
  0x35   :  { %550 = vmatpush.bf16.msra.mxu2 %v993_v7 }
  0x37   :  { %565 = vmatpush.bf16.msra.mxu1 %v985_v15 }
  0x39   :  { %551 = vmatpush.bf16.msra.mxu2 %v981_v13 }
  0x3b   :  { %566 = vmatpush.bf16.msra.mxu1 %v973_v21 }
  0x3d   :  { %552 = vmatpush.bf16.msra.mxu2 %v969_v19 }
  0x8b   :  { %v65_v50 = vpop.f32.mrf.mxu0  ;;  %v89_v51 = vpop.f32.mrf.mxu1 }
  0x93   :  { %v113_v52 = vpop.f32.mrf.mxu2  ;;  %v137_v53 = vpop.f32.mrf.mxu3 }
  0x94   :  { %v67_v54 = vpop.f32.mrf.mxu0  ;;  %v91_v55 = vpop.f32.mrf.mxu1 }
  0x95   :  { %v142_v56 = vpack.c.bf16 %v67_v54, %v65_v50  ;;  %v143_v57 = vpack.c.bf16 %v91_v55, %v89_v51 }
  0x97   :  { %410 = vmatmul.bf16.vlgmr.msrb.gmra.mxu0 %v142_v56  ;;  %424 = vmatmul.bf16.vlgmr.msrb.gmra.mxu1 %v143_v57 }
  0x9b   :  { %v115_v58 = vpop.f32.mrf.mxu2  ;;  %v139_v59 = vpop.f32.mrf.mxu3 }
  0x9c   :  { %v144_v60 = vpack.c.bf16 %v115_v58, %v113_v52  ;;  %v145_v61 = vpack.c.bf16 %v139_v59, %v137_v53 }
  0x9e   :  { %438 = vmatmul.bf16.vlgmr.msrb.gmra.mxu2 %v144_v60  ;;  %452 = vmatmul.bf16.vlgmr.msrb.gmra.mxu3 %v145_v61 }
  0x9f   :  { %577 = vmatpush.bf16.msrb.mxu2 %v1013_v24 }
  0xa3   :  { %578 = vmatpush.bf16.msrb.mxu2 %v1001_v27 }
  0xa7   :  { %579 = vmatpush.bf16.msrb.mxu2 %v989_v30 }
  0xab   :  { %580 = vmatpush.bf16.msrb.mxu2 %v977_v35 }
 0x114   :  { %v411_v33 = vpop.f32.mrf.mxu0  ;;  %v425_v34 = vpop.f32.mrf.mxu1 }
 0x115   :  { %v426_v38 = vadd.f32 %v425_v34, %v411_v33 }
 0x11c   :  { %v413_v39 = vpop.f32.mrf.mxu0  ;;  %v427_v40 = vpop.f32.mrf.mxu1 }
 0x11d   :  { %v428_v42 = vadd.f32 %v427_v40, %v413_v39 }
 0x121   :  { %v439_v36 = vpop.f32.mrf.mxu2  ;;  %v453_v37 = vpop.f32.mrf.mxu3 }
 0x122   :  { %v440_v41 = vadd.f32 %v439_v36, %v426_v38 }
 0x124   :  { %v454_v44 = vadd.f32 %v453_v37, %v440_v41 }
 0x126   :  { %v458_v48 = vmax.f32 %v454_v44, 0.0 }
 0x129   :  { %v441_v43 = vpop.f32.mrf.mxu2  ;;  %v455_v46 = vpop.f32.mrf.mxu3 }
 0x12a   :  { %v442_v45 = vadd.f32 %v441_v43, %v428_v42 }
 0x12c   :  { %v456_v47 = vadd.f32 %v455_v46, %v442_v45 }
 0x12e   :  { %v459_v49 = vmax.f32 %v456_v47, 0.0 }
 0x130   :  { %v460_v50 = vpack.c.bf16 %v459_v49, %v458_v48 }
 0x132   :  { %1014 = vmatmul.msk.bf16.vlgmr.msra.gmra.mxu2 %vm541_vm5, %v460_v50  ;;  %1015 = vmatmul.msk.bf16.vlgmr.msra.gmra.mxu1 %vm541_vm5, %v460_v50 }
 0x142   :  { %1016 = vmatmul.msk.bf16.vlgmr.msrb.gmra.mxu2 %vm541_vm5, %v460_v50 }
 0x1af   :  { %v568_v51 = vpop.f32.mrf.mxu1 }
 0x1b5   :  { %v554_v52 = vpop.f32.mrf.mxu2 }
 0x1b6   :  { %v587_v53 = vpack.c.bf16 %v568_v51, %v554_v52 }
 0x1b7   :  { %v570_v54 = vpop.f32.mrf.mxu1 }
 0x1b8   :  { %v611_v57 = vunpack.c.h.b16 %v587_v53  ;;  %v651_v58 = vunpack.c.l.b16 %v587_v53 }
 0x1bd   :  { %v556_v55 = vpop.f32.mrf.mxu2 }
 0x1be   :  { %v589_v56 = vpack.c.bf16 %v570_v54, %v556_v55 }
 0x1c0   :  { %v612_v59 = vunpack.c.h.b16 %v589_v56  ;;  %v652_v60 = vunpack.c.l.b16 %v589_v56 }
 0x1c2   :  { %v613_v61 = vpack.c.b16 %v612_v59, %v611_v57  ;;  %v653_v62 = vpack.c.b16 %v652_v60, %v651_v58 }
 0x1c4   :  { %629 = vmatpush.bf16.msra.mxu3 %v613_v61  ;;  %668 = vmatpush.bf16.msra.mxu0 %v653_v62 }
 0x1c5   :  { %v582_v1 = vpop.f32.mrf.mxu2 }
 0x1c6   :  { %v588_v2 = vpack.c.bf16 %v582_v1, %v582_v1 }
 0x1c7   :  { %1025 = vmatmul.msk.bf16.vlgmr.msra.gmra.mxu3 %vm615_vm6, %v1097_v63  ;;  %1035 = vmatmul.msk.bf16.vlgmr.msra.gmra.mxu0 %vm615_vm6, %v1095_v0 }
 0x1c8   :  { %v696_v5 = vunpack.c.l.b16 %v588_v2 }
 0x1cd   :  { %v584_v3 = vpop.f32.mrf.mxu2 }
 0x1ce   :  { %v590_v4 = vpack.c.bf16 %v584_v3, %v584_v3 }
 0x1d0   :  { %v697_v6 = vunpack.c.l.b16 %v590_v4 }
 0x1d2   :  { %v698_v7 = vpack.c.b16 %v697_v6, %v696_v5 }
 0x1d4   :  { %713 = vmatpush.bf16.msrb.mxu1 %v698_v7 }
 0x1d7   :  { %1045 = vmatmul.msk.bf16.vlgmr.msrb.gmra.mxu1 %vm615_vm6, %v1099_v8  ;;  %1026 = vmatmul.msk.bf16.gmra.mxu3 %vm615_vm6, %v1098_v9 }
 0x1d8   :  { %1036 = vmatmul.msk.bf16.gmra.mxu0 %vm615_vm6, %v1096_v10 }
 0x1e7   :  { %1046 = vmatmul.msk.bf16.gmra.mxu1 %vm615_vm6, %v1100_v11 }
 0x244   :  { %v670_v12 = vpop.f32.mrf.mxu0 }
 0x24a   :  { %v631_v13 = vpop.f32.mrf.mxu3 }
 0x24b   :  { %v671_v21 = vadd.f32 %v670_v12, %v631_v13 }
 0x24c   :  { %v672_v14 = vpop.f32.mrf.mxu0 }
 0x252   :  { %v633_v16 = vpop.f32.mrf.mxu3 }
 0x253   :  { %v673_v22 = vadd.f32 %v672_v14, %v633_v16 }
 0x254   :  { %v715_v15 = vpop.f32.mrf.mxu1 }
 0x255   :  { %v675_v19 = vpop.f32.mrf.mxu0  ;;  %v725_v27 = vadd.f32 %v715_v15, %v671_v21 }
 0x25a   :  { %v636_v18 = vpop.f32.mrf.mxu3 }
 0x25b   :  { %v676_v23 = vadd.f32 %v675_v19, %v636_v18  ;;  %v782_v19 = vld [vmem:[%s1400_s5] sm:$0x1] }
 0x25c   :  { %v717_v17 = vpop.f32.mrf.mxu1 }
 0x25d   :  { %v726_v24 = vadd.f32 %v717_v17, %v673_v22  ;;  %v677_v26 = vpop.f32.mrf.mxu0 }
 0x25f   :  { %v729_v29 = vadd.f32 %v726_v24, %v725_v27 }
 0x262   :  { %v638_v25 = vpop.f32.mrf.mxu3 }
 0x263   :  { %v678_v30 = vadd.f32 %v677_v26, %v638_v25 }
 0x264   :  { %v720_v20 = vpop.f32.mrf.mxu1 }
 0x265   :  { %v727_v28 = vadd.f32 %v720_v20, %v676_v23  ;;  %v1105_v23 = vld [vmem:[%s1399_s6] ss:$0 sm:$0xff] }
 0x267   :  { %v730_v32 = vadd.f32 %v729_v29, %v727_v28 }
 0x26c   :  { %v722_v31 = vpop.f32.mrf.mxu1 }
 0x26d   :  { %v728_v33 = vadd.f32 %v722_v31, %v678_v30 }
 0x26f   :  { %v731_v34 = vadd.f32 %v730_v32, %v728_v33 }
 0x271   :  { %v732_v35 = vrot.slane %v731_v34, 4 }
 0x273   :  { %v733_v36 = vadd.f32 %v732_v35, %v731_v34 }
 0x275   :  { %v734_v37 = vrot.slane %v733_v36, 2 }
 0x277   :  { %v735_v38 = vadd.f32 %v734_v37, %v733_v36 }
 0x279   :  { %v736_v39 = vrot.slane %v735_v38, 1 }
 0x27b   :  { %v737_v40 = vadd.f32 %v736_v39, %v735_v38 }
 0x27d   :  { %738 = vrot.lane.b32.xlu0 %v737_v40, %s1108_s3 }
 0x2ef   :  { %v739_v41 = vpop.permute.xlu0 %738 }
 0x2f0   :  { %v740_v42 = vadd.f32 %v739_v41, %v737_v40 }
 0x2f2   :  { %741 = vrot.lane.b32.xlu0 %v740_v42, %s1109_s0 }
 0x364   :  { %v742_v43 = vpop.permute.xlu0 %741 }
 0x365   :  { %v743_v44 = vadd.f32 %v742_v43, %v740_v42 }
 0x367   :  { %744 = vrot.lane.b32.xlu1 %v743_v44, %s1110_s12 }
 0x3d9   :  { %v745_v45 = vpop.permute.xlu1 %744 }
 0x3da   :  { %v746_v46 = vadd.f32 %v745_v45, %v743_v44 }
 0x3dc   :  { %747 = vrot.lane.b32.xlu1 %v746_v46, %s1111_s13 }
 0x44e   :  { %v748_v47 = vpop.permute.xlu1 %747 }
 0x44f   :  { %v749_v48 = vadd.f32 %v748_v47, %v746_v46 }
 0x451   :  { %v750_v49 = vmul.f32 0.001953125, %v749_v48 }
 0x453   :  { %v751_v50 = vperm.slane %v750_v49, 0 }
 0x455   :  { %v752_v51 = vsub.f32 %v725_v27, %v751_v50  ;;  %v753_v52 = vsub.f32 %v726_v24, %v751_v50  ;;  %v754_v53 = vsub.f32 %v727_v28, %v751_v50  ;;  %v755_v54 = vsub.f32 %v728_v33, %v751_v50 }
 0x457   :  { %v756_v55 = vmul.f32 %v752_v51, %v752_v51  ;;  %v757_v56 = vmul.f32 %v753_v52, %v753_v52  ;;  %v758_v57 = vmul.f32 %v754_v53, %v754_v53  ;;  %v759_v59 = vmul.f32 %v755_v54, %v755_v54 }
 0x459   :  { %v760_v58 = vadd.f32 %v757_v56, %v756_v55 }
 0x45b   :  { %v761_v60 = vadd.f32 %v760_v58, %v758_v57 }
 0x45d   :  { %v762_v61 = vadd.f32 %v761_v60, %v759_v59 }
 0x45f   :  { %v763_v62 = vrot.slane %v762_v61, 4 }
 0x461   :  { %v764_v63 = vadd.f32 %v763_v62, %v762_v61 }
 0x463   :  { %v765_v0 = vrot.slane %v764_v63, 2 }
 0x465   :  { %v766_v1 = vadd.f32 %v765_v0, %v764_v63 }
 0x467   :  { %v767_v2 = vrot.slane %v766_v1, 1 }
 0x469   :  { %v768_v3 = vadd.f32 %v767_v2, %v766_v1 }
 0x46b   :  { %769 = vrot.lane.b32.xlu2 %v768_v3, %s1108_s3 }
 0x4c5   :  { %v770_v4 = vpop.permute.xlu2 %769 }
 0x4c6   :  { %v771_v5 = vadd.f32 %v770_v4, %v768_v3 }
 0x4c8   :  { %772 = vrot.lane.b32.xlu2 %v771_v5, %s1109_s0 }
 0x522   :  { %v773_v6 = vpop.permute.xlu2 %772 }
 0x523   :  { %v774_v7 = vadd.f32 %v773_v6, %v771_v5 }
 0x525   :  { %775 = vrot.lane.b32.xlu0 %v774_v7, %s1110_s12 }
 0x597   :  { %v776_v8 = vpop.permute.xlu0 %775 }
 0x598   :  { %v777_v9 = vadd.f32 %v776_v8, %v774_v7 }
 0x59a   :  { %778 = vrot.lane.b32.xlu1 %v777_v9, %s1111_s13 }
 0x60c   :  { %v779_v10 = vpop.permute.xlu1 %778 }
 0x60d   :  { %v780_v11 = vadd.f32 %v779_v10, %v777_v9 }
 0x60f   :  { %v781_v12 = vmul.f32 0.001953125, %v780_v11 }
 0x611   :  { %v783_v13 = vadd.f32 1e-05, %v781_v12 }
 0x613   :  { %1106 = vrsqrt.f32 %v783_v13  ;;  %vm790_vm8 = vweird.f32 %v783_v13 }
 0x619   :  { %v1107_v14 = vpop.eup %1106 }
 0x61a   :  { %v785_v15 = vmul.f32 %v1107_v14, %v783_v13  ;;  %vm791_vm7 = vweird.f32 %v1107_v14 }
 0x61b   :  { %vm792_vm9 = vmor %vm790_vm8, %vm791_vm7 }
 0x61c   :  { %v786_v16 = vmul.f32 %v1107_v14, %v785_v15 }
 0x61e   :  { %v787_v17 = vmul.f32 0.5, %v786_v16 }
 0x620   :  { %v788_v18 = vsub.f32 1.5, %v787_v17 }
 0x622   :  { %v789_v20 = vmul.f32 %v1107_v14, %v788_v18 }
 0x624   :  { %v793_v21 = vsel %vm792_vm9, %v1107_v14, %v789_v20 }
 0x625   :  { %v794_v22 = vmul.f32 %v793_v21, %v782_v19 }
 0x627   :  { %v796_v24 = vperm.slane %v794_v22, 0 }
 0x629   :  { %v798_v25 = vmul.f32 %v796_v24, %v752_v51  ;;  %v799_v26 = vmul.f32 %v796_v24, %v753_v52  ;;  %v800_v27 = vmul.f32 %v796_v24, %v754_v53  ;;  %v801_v28 = vmul.f32 %v796_v24, %v755_v54 }
 0x62b   :  { %v806_v29 = vadd.f32 %v1105_v23, %v798_v25  ;;  %v807_v30 = vadd.f32 %v1105_v23, %v799_v26  ;;  %v808_v31 = vadd.f32 %v1105_v23, %v800_v27  ;;  %v809_v32 = vadd.f32 %v1105_v23, %v801_v28 }
 0x62d   :  { %810 = vst [vmem:[%s1401_s7] sm:$0xff] %v806_v29 }
 0x62e   :  { %811 = vst [vmem:[%s1401_s7 + $0x8] sm:$0xff] %v807_v30 }
 0x62f   :  { %812 = vst [vmem:[%s1401_s7 + $0x10] sm:$0xff] %v808_v31 }
 0x630   :  { %813 = vst [vmem:[%s1401_s7 + $0x18] sm:$0xff] %v809_v32 }

</bundles_post_ra>
